<compile_context>
chip_gen: v7x
topology: tpu7x:2x2x1
jax: 0.10.0
libtpu: 0.0.40
codegen_flags: <defaults>
</compile_context>

<pallas_src>
import jax
import jax.numpy as jnp
from jax.experimental import pallas as pl
from jax.experimental.pallas import tpu as pltpu


# --------------------------------------------------------------------------- #
# Pallas kernel
# --------------------------------------------------------------------------- #
def _speech_loss_kernel(x1e_ref, x1t_ref, x2e_ref, x2t_ref, out_ref, acc_ref):
    # Grid = (b_group, corr_col_tile, corr_row_tile) = (parallel, arb, arb).
    ri = pl.program_id(1)
    pi = pl.program_id(2)

    @pl.when(jnp.logical_and(ri == 0, pi == 0))
    def _():
        acc_ref[...] = jnp.zeros_like(acc_ref)

    TB = x1e_ref.shape[0]
    tp = x1e_ref.shape[1]
    tr = x2e_ref.shape[2]
    n_lane_groups = tr // 128

    # Per-step partial sum kept at vreg scale (tp, 128): fold |corr_e - corr_t|
    # across the tr/128 lane-tile groups with plain VPU adds (slices are
    # lane-tile aligned -> no relayout, no cross-lane reduction).  Only ONE
    # (tp, 128) VMEM read-modify-write of the carried accumulator per step.
    step_sum = jnp.zeros((tp, 128), jnp.float32)
    for t in range(TB):                       # static unroll; TB is small (<=8)
        d_e = jnp.dot(x1e_ref[t], x2e_ref[t],
                      preferred_element_type=jnp.float32)
        d_t = jnp.dot(x1t_ref[t], x2t_ref[t],
                      preferred_element_type=jnp.float32)
        d = jnp.abs(d_e - d_t)                # (tp, tr), never written to HBM
        for g in range(n_lane_groups):        # pure vreg-to-vreg VPU adds
            step_sum = step_sum + d[:, g * 128:(g + 1) * 128]
    acc_ref[...] += step_sum

    # Per-b-group partial, written exactly once — right before the output
    # block index changes.  The tiny final reduction happens in plain JAX.
    @pl.when(jnp.logical_and(ri == pl.num_programs(1) - 1,
                             pi == pl.num_programs(2) - 1))
    def _():
        out_ref[0] = acc_ref[...]


# --------------------------------------------------------------------------- #
# Plain-JAX glue (normalisation, padding quirk, unfold, patch matrices)
# --------------------------------------------------------------------------- #
def _round_up(x, m):
    return ((x + m - 1) // m) * m


def _normalize(x):
    x = x.astype(jnp.float32)
    # torch.Tensor.std() is unbiased by default -> ddof=1
    return (x - jnp.mean(x)) / jnp.std(x, ddof=1)


def _unfold2d(x, kernel_size, stride):
    # x: (B, C, Tp, Fp) -> (B, C, Tn, Fn, K, K); matches
    # x.unfold(2, K, S).unfold(3, K, S) in PyTorch.
    B, C, Tp, Fp = x.shape
    K, S = kernel_size, stride
    Tn = (Tp - K) // S + 1
    Fn = (Fp - K) // S + 1
    if K == S:
        # Non-overlapping patches: layout-only reshape + transpose (no gather).
        x = x[:, :, :Tn * K, :Fn * K]
        x = x.reshape(B, C, Tn, K, Fn, K)
        x = jnp.transpose(x, (0, 1, 2, 4, 3, 5))
    else:
        t_idx = jnp.arange(Tn)[:, None] * S + jnp.arange(K)[None, :]  # (Tn, K)
        f_idx = jnp.arange(Fn)[:, None] * S + jnp.arange(K)[None, :]  # (Fn, K)
        x = x[:, :, t_idx, :]                      # (B, C, Tn, K, Fp)
        x = x[:, :, :, :, f_idx]                   # (B, C, Tn, K, Fn, K)
        x = jnp.transpose(x, (0, 1, 2, 4, 3, 5))   # (B, C, Tn, Fn, K, K)
    return x, Tn, Fn


def _patch_matrices(enhanced, target, kernel_size, stride):
    """Build (x1, x2) patch matrices exactly as the PyTorch module's
    compute_correlation() sees them (x2 is a re-chunking of the same flat
    buffer, deliberately NOT a transpose)."""
    B, C, T, Fq = enhanced.shape
    K, S = kernel_size, stride

    enh = _normalize(enhanced)
    tgt = _normalize(target)

    time_padding = K - T % K
    if time_padding == K:
        time_padding = 0
    frequency_padding = K - Fq % K
    if frequency_padding == K:
        frequency_padding = 0
    # F.pad(x, (0, time_padding, 0, frequency_padding)): the LAST dim
    # (frequency) receives time_padding and the second-to-last dim (time)
    # receives frequency_padding -- reproduce the module's quirk exactly.
    pad_cfg = ((0, 0), (0, 0), (0, frequency_padding), (0, time_padding))
    enh_p = jnp.pad(enh, pad_cfg)
    tgt_p = jnp.pad(tgt, pad_cfg)

    enh_u, Tn, Fn = _unfold2d(enh_p, K, S)
    tgt_u, _, _ = _unfold2d(tgt_p, K, S)

    P = Tn * Fn
    Q = K * K
    BC = B * C

    def _as_mats(u):
        flat = u.reshape(BC, P * Q)
        x1 = flat.reshape(BC, P, Q)   # correlation_x_1
        x2 = flat.reshape(BC, Q, P)   # correlation_x_2 (NOT a transpose)
        return x1, x2

    x1e, x2e = _as_mats(enh_u)
    x1t, x2t = _as_mats(tgt_u)
    return x1e, x2e, x1t, x2t, BC, P, Q


# --------------------------------------------------------------------------- #
# Generation-aware tiling
# --------------------------------------------------------------------------- #
def _vmem_capacity_bytes():
    # v5e / v6e: 128 MiB, v7x: 64 MiB per TensorCore.
    try:
        return int(pltpu.get_tpu_info().vmem_capacity_bytes)
    except Exception:
        return 64 * 1024 * 1024  # conservative fallback (v7x per-core VMEM)


def _choose_tiling(BC, P, Q, in_bytes):
    """Pick (TB, tp, tr) from an explicit VMEM accounting of the real
    consumers: double-buffered input blocks, output block, carried accumulator
    and the per-slice matmul intermediates."""
    MiB = 1024 * 1024
    cap = _vmem_capacity_bytes()
    budget = max(32 * MiB, min(100 * MiB, cap - 16 * MiB))
    big_vmem = cap >= 96 * MiB                                  # v5e/v6e vs v7x

    tp = min(512 if big_vmem else 256, _round_up(P, 8))         # corr row tile
    tr = min(2048 if big_vmem else 1024, _round_up(P, 128))     # corr col tile
    TB = min(8, BC)                                             # (b,c) per step

    def footprint(TB_, tp_, tr_):
        q_lane = _round_up(Q, 128)      # x1 blocks are lane-padded in Q
        q_sub = _round_up(Q, 8)         # x2 blocks are sublane-padded in Q
        x1_blk = TB_ * tp_ * q_lane * in_bytes
        x2_blk = TB_ * q_sub * tr_ * in_bytes
        out_blk = tp_ * 128 * 4
        acc = tp_ * 128 * 4
        inter = (2 * tp_ * tr_ + tp_ * 128) * 4   # d_e, d_t, step_sum values
        # 2 x1 arrays + 2 x2 arrays, each double-buffered, + out double-buffer.
        return (2 * 2 * x1_blk) + (2 * 2 * x2_blk) + 2 * out_blk + acc + inter

    while footprint(TB, tp, tr) > budget:
        if TB > 1:
            TB = max(1, TB // 2)
        elif tr > 512:
            tr = max(512, _round_up(tr // 2, 128))
        elif tp > 64:
            tp = max(64, _round_up(tp // 2, 8))
        else:
            break
    return TB, tp, tr, budget


# --------------------------------------------------------------------------- #
# Public entry points
# --------------------------------------------------------------------------- #
def speech_loss(enhanced_audio, target_audio, kernel_size, stride,
                matmul_dtype=jnp.bfloat16):
    # matmul_dtype=jnp.float32 bit-matches the PyTorch module; bf16 (default)
    # halves HBM/VMEM/DMA bytes and is MXU-native (accumulation stays f32).
    x1e, x2e, x1t, x2t, BC, P, Q = _patch_matrices(
        enhanced_audio, target_audio, kernel_size, stride)

    in_bytes = jnp.dtype(matmul_dtype).itemsize
    TB, tp, tr, vmem_budget = _choose_tiling(BC, P, Q, in_bytes)

    Pp = _round_up(P, tp)        # padded correlation rows
    Pcp = _round_up(P, tr)       # padded correlation columns (lane-dense)
    BCp = _round_up(BC, TB)      # padded (b, c) slices
    nB = BCp // TB

    # Zero padding is exact: zero rows / columns / (b,c) slices contribute 0
    # to the |corr_e - corr_t| sum; only the final divisor uses true sizes.
    def _pad_rows(x):            # (BC, P, Q) -> (BCp, Pp, Q)
        return jnp.pad(x, ((0, BCp - BC), (0, Pp - P), (0, 0))).astype(matmul_dtype)

    def _pad_cols(x):            # (BC, Q, P) -> (BCp, Q, Pcp)
        return jnp.pad(x, ((0, BCp - BC), (0, 0), (0, Pcp - P))).astype(matmul_dtype)

    x1e_p, x1t_p = _pad_rows(x1e), _pad_rows(x1t)
    x2e_p, x2t_p = _pad_cols(x2e), _pad_cols(x2t)

    grid = (nB, Pcp // tr, Pp // tp)

    partials = pl.pallas_call(
        _speech_loss_kernel,
        out_shape=jax.ShapeDtypeStruct((nB, tp, 128), jnp.float32),
        grid_spec=pltpu.PrefetchScalarGridSpec(
            num_scalar_prefetch=0,
            grid=grid,
            in_specs=[
                # x1 (rows of the correlation): blocked over (b,c) groups + rows.
                pl.BlockSpec((TB, tp, Q), lambda b, r, p: (b, p, 0)),
                pl.BlockSpec((TB, tp, Q), lambda b, r, p: (b, p, 0)),
                # x2 (columns): blocked over (b,c) groups + column tiles; the
                # block stays resident across all row tiles (p innermost), so
                # default 2-deep buffering already hides its DMA.
                pl.BlockSpec((TB, Q, tr), lambda b, r, p: (b, 0, r)),
                pl.BlockSpec((TB, Q, tr), lambda b, r, p: (b, 0, r)),
            ],
            # Lane-dense per-b-group partials (unmasked stores).
            out_specs=pl.BlockSpec((1, tp, 128), lambda b, r, p: (b, 0, 0)),
            scratch_shapes=[pltpu.VMEM((tp, 128), jnp.float32)],
        ),
        compiler_params=pltpu.CompilerParams(
            # b groups are independent -> parallel (uses both v7x TensorCores);
            # the column/row axes carry the accumulator -> arbitrary.
            dimension_semantics=("parallel", "arbitrary", "arbitrary"),
            vmem_limit_bytes=int(vmem_budget),
        ),
    )(x1e_p, x1t_p, x2e_p, x2t_p)

    count = BC * P * P  # elements of the (B, C, P, P) correlation tensor
    correlation_loss = jnp.sum(partials) / count  # nn.L1Loss (mean reduction)
    return correlation_loss * 0.01


def speech_loss_ref(enhanced_audio, target_audio, kernel_size, stride,
                    matmul_dtype=jnp.bfloat16):
    # Pure-JAX reference with identical semantics, for verification.
    x1e, x2e, x1t, x2t, _, _, _ = _patch_matrices(
        enhanced_audio, target_audio, kernel_size, stride)
    x1e, x2e, x1t, x2t = (v.astype(matmul_dtype) for v in (x1e, x2e, x1t, x2t))
    corr_e = jnp.einsum('bpq,bqr->bpr', x1e, x2e,
                        preferred_element_type=jnp.float32)
    corr_t = jnp.einsum('bpq,bqr->bpr', x1t, x2t,
                        preferred_element_type=jnp.float32)
    return jnp.mean(jnp.abs(corr_e - corr_t)) * 0.01


if __name__ == "__main__":
    # Module hyper-parameters (from __init__): kernel_size, stride.
    kernel_size, stride = 4, 4
    B, C, T, Fq = 2, 4, 16, 12  # NCHW spectrogram-like inputs

    key = jax.random.PRNGKey(0)
    k1, k2 = jax.random.split(key)
    enhanced = jax.random.normal(k1, (B, C, T, Fq), dtype=jnp.float32)
    target = jax.random.normal(k2, (B, C, T, Fq), dtype=jnp.float32)

    loss = jax.block_until_ready(
        speech_loss(enhanced, target, kernel_size, stride))
    ref = jax.block_until_ready(
        speech_loss_ref(enhanced, target, kernel_size, stride))
    assert jnp.allclose(loss, ref, rtol=5e-3, atol=1e-6), (loss, ref)

    print("KERNEL_OK")
</pallas_src>

<mosaic_0001>
module attributes {stable_mosaic.version = 11 : i64} {
  func.func @_speech_loss_kernel(%arg0: i32, %arg1: i32, %arg2: i32, %arg3: memref<8x16x16xbf16, #tpu.memory_space<vmem>>, %arg4: memref<8x16x16xbf16, #tpu.memory_space<vmem>>, %arg5: memref<8x16x128xbf16, #tpu.memory_space<vmem>>, %arg6: memref<8x16x128xbf16, #tpu.memory_space<vmem>>, %arg7: memref<1x16x128xf32, #tpu.memory_space<vmem>>, %arg8: memref<16x128xf32, #tpu.memory_space<vmem>>) attributes {dimension_semantics = [#tpu.dimension_semantics<parallel>, #tpu.dimension_semantics<arbitrary>, #tpu.dimension_semantics<arbitrary>], iteration_bounds = array<i64: 1, 1, 1>, scalar_prefetch = 0 : i64, scratch_operands = 1 : i64, tpu.core_type = #tpu.core_type<tc>, window_params = [{transform_indices = @transform_0, window_bounds = array<i64: 8, 16, 16>}, {transform_indices = @transform_1, window_bounds = array<i64: 8, 16, 16>}, {transform_indices = @transform_2, window_bounds = array<i64: 8, 16, 128>}, {transform_indices = @transform_3, window_bounds = array<i64: 8, 16, 128>}, {transform_indices = @transform_4, window_bounds = array<i64: 1, 16, 128>}]} {
    %c0_i32 = arith.constant 0 : i32
    %0 = arith.cmpi eq, %arg1, %c0_i32 : i32
    %c0_i32_0 = arith.constant 0 : i32
    %1 = arith.cmpi eq, %arg2, %c0_i32_0 : i32
    %2 = arith.andi %0, %1 : i1
    %3 = arith.extui %2 : i1 to i32
    %c0_i32_1 = arith.constant 0 : i32
    %4 = arith.cmpi ne, %3, %c0_i32_1 : i32
    scf.if %4 {
      %cst_113 = arith.constant 0.000000e+00 : f32
      %118 = vector.broadcast %cst_113 : f32 to vector<16x128xf32>
      %c0_114 = arith.constant 0 : index
      %c0_115 = arith.constant 0 : index
      %119 = vector.load %arg8[%c0_114, %c0_115] : memref<16x128xf32, #tpu.memory_space<vmem>>, vector<16x128xf32>
      tpu.vector_store %arg8[%c0_114, %c0_115], %118 {strides = array<i32>} : memref<16x128xf32, #tpu.memory_space<vmem>>, vector<16x128xf32>,
    } else {
    }
    %cst = arith.constant 0.000000e+00 : f32
    %5 = vector.broadcast %cst : f32 to vector<16x128xf32>
    %c0 = arith.constant 0 : index
    %c0_2 = arith.constant 0 : index
    %c0_3 = arith.constant 0 : index
    %6 = vector.load %arg3[%c0, %c0_2, %c0_3] : memref<8x16x16xbf16, #tpu.memory_space<vmem>>, vector<1x16x16xbf16>
    %7 = vector.shape_cast %6 : vector<1x16x16xbf16> to vector<16x16xbf16>
    %c0_4 = arith.constant 0 : index
    %c0_5 = arith.constant 0 : index
    %c0_6 = arith.constant 0 : index
    %8 = vector.load %arg5[%c0_4, %c0_5, %c0_6] : memref<8x16x128xbf16, #tpu.memory_space<vmem>>, vector<1x16x128xbf16>
    %9 = vector.shape_cast %8 : vector<1x16x128xbf16> to vector<16x128xbf16>
    %cst_7 = arith.constant dense<0.000000e+00> : vector<16x128xf32>
    %10 = tpu.matmul %7, %9, %cst_7 {dimension_numbers = #tpu.dot_dimension_numbers<[1], [0], [0], [1], [0, 0, 1, 1], [], []>} : vector<16x16xbf16>, vector<16x128xbf16>, vector<16x128xf32> -> vector<16x128xf32>
    %c0_8 = arith.constant 0 : index
    %c0_9 = arith.constant 0 : index
    %c0_10 = arith.constant 0 : index
    %11 = vector.load %arg4[%c0_8, %c0_9, %c0_10] : memref<8x16x16xbf16, #tpu.memory_space<vmem>>, vector<1x16x16xbf16>
    %12 = vector.shape_cast %11 : vector<1x16x16xbf16> to vector<16x16xbf16>
    %c0_11 = arith.constant 0 : index
    %c0_12 = arith.constant 0 : index
    %c0_13 = arith.constant 0 : index
    %13 = vector.load %arg6[%c0_11, %c0_12, %c0_13] : memref<8x16x128xbf16, #tpu.memory_space<vmem>>, vector<1x16x128xbf16>
    %14 = vector.shape_cast %13 : vector<1x16x128xbf16> to vector<16x128xbf16>
    %cst_14 = arith.constant dense<0.000000e+00> : vector<16x128xf32>
    %15 = tpu.matmul %12, %14, %cst_14 {dimension_numbers = #tpu.dot_dimension_numbers<[1], [0], [0], [1], [0, 0, 1, 1], [], []>} : vector<16x16xbf16>, vector<16x128xbf16>, vector<16x128xf32> -> vector<16x128xf32>
    %16 = arith.subf %10, %15 : vector<16x128xf32>
    %17 = math.absf %16 : vector<16x128xf32>
    %18 = arith.addf %5, %17 : vector<16x128xf32>
    %c1 = arith.constant 1 : index
    %c0_15 = arith.constant 0 : index
    %c0_16 = arith.constant 0 : index
    %19 = vector.load %arg3[%c1, %c0_15, %c0_16] : memref<8x16x16xbf16, #tpu.memory_space<vmem>>, vector<1x16x16xbf16>
    %20 = vector.shape_cast %19 : vector<1x16x16xbf16> to vector<16x16xbf16>
    %c1_17 = arith.constant 1 : index
    %c0_18 = arith.constant 0 : index
    %c0_19 = arith.constant 0 : index
    %21 = vector.load %arg5[%c1_17, %c0_18, %c0_19] : memref<8x16x128xbf16, #tpu.memory_space<vmem>>, vector<1x16x128xbf16>
    %22 = vector.shape_cast %21 : vector<1x16x128xbf16> to vector<16x128xbf16>
    %cst_20 = arith.constant dense<0.000000e+00> : vector<16x128xf32>
    %23 = tpu.matmul %20, %22, %cst_20 {dimension_numbers = #tpu.dot_dimension_numbers<[1], [0], [0], [1], [0, 0, 1, 1], [], []>} : vector<16x16xbf16>, vector<16x128xbf16>, vector<16x128xf32> -> vector<16x128xf32>
    %c1_21 = arith.constant 1 : index
    %c0_22 = arith.constant 0 : index
    %c0_23 = arith.constant 0 : index
    %24 = vector.load %arg4[%c1_21, %c0_22, %c0_23] : memref<8x16x16xbf16, #tpu.memory_space<vmem>>, vector<1x16x16xbf16>
    %25 = vector.shape_cast %24 : vector<1x16x16xbf16> to vector<16x16xbf16>
    %c1_24 = arith.constant 1 : index
    %c0_25 = arith.constant 0 : index
    %c0_26 = arith.constant 0 : index
    %26 = vector.load %arg6[%c1_24, %c0_25, %c0_26] : memref<8x16x128xbf16, #tpu.memory_space<vmem>>, vector<1x16x128xbf16>
    %27 = vector.shape_cast %26 : vector<1x16x128xbf16> to vector<16x128xbf16>
    %cst_27 = arith.constant dense<0.000000e+00> : vector<16x128xf32>
    %28 = tpu.matmul %25, %27, %cst_27 {dimension_numbers = #tpu.dot_dimension_numbers<[1], [0], [0], [1], [0, 0, 1, 1], [], []>} : vector<16x16xbf16>, vector<16x128xbf16>, vector<16x128xf32> -> vector<16x128xf32>
    %29 = arith.subf %23, %28 : vector<16x128xf32>
    %30 = math.absf %29 : vector<16x128xf32>
    %31 = arith.addf %18, %30 : vector<16x128xf32>
    %c2 = arith.constant 2 : index
    %c0_28 = arith.constant 0 : index
    %c0_29 = arith.constant 0 : index
    %32 = vector.load %arg3[%c2, %c0_28, %c0_29] : memref<8x16x16xbf16, #tpu.memory_space<vmem>>, vector<1x16x16xbf16>
    %33 = vector.shape_cast %32 : vector<1x16x16xbf16> to vector<16x16xbf16>
    %c2_30 = arith.constant 2 : index
    %c0_31 = arith.constant 0 : index
    %c0_32 = arith.constant 0 : index
    %34 = vector.load %arg5[%c2_30, %c0_31, %c0_32] : memref<8x16x128xbf16, #tpu.memory_space<vmem>>, vector<1x16x128xbf16>
    %35 = vector.shape_cast %34 : vector<1x16x128xbf16> to vector<16x128xbf16>
    %cst_33 = arith.constant dense<0.000000e+00> : vector<16x128xf32>
    %36 = tpu.matmul %33, %35, %cst_33 {dimension_numbers = #tpu.dot_dimension_numbers<[1], [0], [0], [1], [0, 0, 1, 1], [], []>} : vector<16x16xbf16>, vector<16x128xbf16>, vector<16x128xf32> -> vector<16x128xf32>
    %c2_34 = arith.constant 2 : index
    %c0_35 = arith.constant 0 : index
    %c0_36 = arith.constant 0 : index
    %37 = vector.load %arg4[%c2_34, %c0_35, %c0_36] : memref<8x16x16xbf16, #tpu.memory_space<vmem>>, vector<1x16x16xbf16>
    %38 = vector.shape_cast %37 : vector<1x16x16xbf16> to vector<16x16xbf16>
    %c2_37 = arith.constant 2 : index
    %c0_38 = arith.constant 0 : index
    %c0_39 = arith.constant 0 : index
    %39 = vector.load %arg6[%c2_37, %c0_38, %c0_39] : memref<8x16x128xbf16, #tpu.memory_space<vmem>>, vector<1x16x128xbf16>
    %40 = vector.shape_cast %39 : vector<1x16x128xbf16> to vector<16x128xbf16>
    %cst_40 = arith.constant dense<0.000000e+00> : vector<16x128xf32>
    %41 = tpu.matmul %38, %40, %cst_40 {dimension_numbers = #tpu.dot_dimension_numbers<[1], [0], [0], [1], [0, 0, 1, 1], [], []>} : vector<16x16xbf16>, vector<16x128xbf16>, vector<16x128xf32> -> vector<16x128xf32>
    %42 = arith.subf %36, %41 : vector<16x128xf32>
    %43 = math.absf %42 : vector<16x128xf32>
    %44 = arith.addf %31, %43 : vector<16x128xf32>
    %c3 = arith.constant 3 : index
    %c0_41 = arith.constant 0 : index
    %c0_42 = arith.constant 0 : index
    %45 = vector.load %arg3[%c3, %c0_41, %c0_42] : memref<8x16x16xbf16, #tpu.memory_space<vmem>>, vector<1x16x16xbf16>
    %46 = vector.shape_cast %45 : vector<1x16x16xbf16> to vector<16x16xbf16>
    %c3_43 = arith.constant 3 : index
    %c0_44 = arith.constant 0 : index
    %c0_45 = arith.constant 0 : index
    %47 = vector.load %arg5[%c3_43, %c0_44, %c0_45] : memref<8x16x128xbf16, #tpu.memory_space<vmem>>, vector<1x16x128xbf16>
    %48 = vector.shape_cast %47 : vector<1x16x128xbf16> to vector<16x128xbf16>
    %cst_46 = arith.constant dense<0.000000e+00> : vector<16x128xf32>
    %49 = tpu.matmul %46, %48, %cst_46 {dimension_numbers = #tpu.dot_dimension_numbers<[1], [0], [0], [1], [0, 0, 1, 1], [], []>} : vector<16x16xbf16>, vector<16x128xbf16>, vector<16x128xf32> -> vector<16x128xf32>
    %c3_47 = arith.constant 3 : index
    %c0_48 = arith.constant 0 : index
    %c0_49 = arith.constant 0 : index
    %50 = vector.load %arg4[%c3_47, %c0_48, %c0_49] : memref<8x16x16xbf16, #tpu.memory_space<vmem>>, vector<1x16x16xbf16>
    %51 = vector.shape_cast %50 : vector<1x16x16xbf16> to vector<16x16xbf16>
    %c3_50 = arith.constant 3 : index
    %c0_51 = arith.constant 0 : index
    %c0_52 = arith.constant 0 : index
    %52 = vector.load %arg6[%c3_50, %c0_51, %c0_52] : memref<8x16x128xbf16, #tpu.memory_space<vmem>>, vector<1x16x128xbf16>
    %53 = vector.shape_cast %52 : vector<1x16x128xbf16> to vector<16x128xbf16>
    %cst_53 = arith.constant dense<0.000000e+00> : vector<16x128xf32>
    %54 = tpu.matmul %51, %53, %cst_53 {dimension_numbers = #tpu.dot_dimension_numbers<[1], [0], [0], [1], [0, 0, 1, 1], [], []>} : vector<16x16xbf16>, vector<16x128xbf16>, vector<16x128xf32> -> vector<16x128xf32>
    %55 = arith.subf %49, %54 : vector<16x128xf32>
    %56 = math.absf %55 : vector<16x128xf32>
    %57 = arith.addf %44, %56 : vector<16x128xf32>
    %c4 = arith.constant 4 : index
    %c0_54 = arith.constant 0 : index
    %c0_55 = arith.constant 0 : index
    %58 = vector.load %arg3[%c4, %c0_54, %c0_55] : memref<8x16x16xbf16, #tpu.memory_space<vmem>>, vector<1x16x16xbf16>
    %59 = vector.shape_cast %58 : vector<1x16x16xbf16> to vector<16x16xbf16>
    %c4_56 = arith.constant 4 : index
    %c0_57 = arith.constant 0 : index
    %c0_58 = arith.constant 0 : index
    %60 = vector.load %arg5[%c4_56, %c0_57, %c0_58] : memref<8x16x128xbf16, #tpu.memory_space<vmem>>, vector<1x16x128xbf16>
    %61 = vector.shape_cast %60 : vector<1x16x128xbf16> to vector<16x128xbf16>
    %cst_59 = arith.constant dense<0.000000e+00> : vector<16x128xf32>
    %62 = tpu.matmul %59, %61, %cst_59 {dimension_numbers = #tpu.dot_dimension_numbers<[1], [0], [0], [1], [0, 0, 1, 1], [], []>} : vector<16x16xbf16>, vector<16x128xbf16>, vector<16x128xf32> -> vector<16x128xf32>
    %c4_60 = arith.constant 4 : index
    %c0_61 = arith.constant 0 : index
    %c0_62 = arith.constant 0 : index
    %63 = vector.load %arg4[%c4_60, %c0_61, %c0_62] : memref<8x16x16xbf16, #tpu.memory_space<vmem>>, vector<1x16x16xbf16>
    %64 = vector.shape_cast %63 : vector<1x16x16xbf16> to vector<16x16xbf16>
    %c4_63 = arith.constant 4 : index
    %c0_64 = arith.constant 0 : index
    %c0_65 = arith.constant 0 : index
    %65 = vector.load %arg6[%c4_63, %c0_64, %c0_65] : memref<8x16x128xbf16, #tpu.memory_space<vmem>>, vector<1x16x128xbf16>
    %66 = vector.shape_cast %65 : vector<1x16x128xbf16> to vector<16x128xbf16>
    %cst_66 = arith.constant dense<0.000000e+00> : vector<16x128xf32>
    %67 = tpu.matmul %64, %66, %cst_66 {dimension_numbers = #tpu.dot_dimension_numbers<[1], [0], [0], [1], [0, 0, 1, 1], [], []>} : vector<16x16xbf16>, vector<16x128xbf16>, vector<16x128xf32> -> vector<16x128xf32>
    %68 = arith.subf %62, %67 : vector<16x128xf32>
    %69 = math.absf %68 : vector<16x128xf32>
    %70 = arith.addf %57, %69 : vector<16x128xf32>
    %c5 = arith.constant 5 : index
    %c0_67 = arith.constant 0 : index
    %c0_68 = arith.constant 0 : index
    %71 = vector.load %arg3[%c5, %c0_67, %c0_68] : memref<8x16x16xbf16, #tpu.memory_space<vmem>>, vector<1x16x16xbf16>
    %72 = vector.shape_cast %71 : vector<1x16x16xbf16> to vector<16x16xbf16>
    %c5_69 = arith.constant 5 : index
    %c0_70 = arith.constant 0 : index
    %c0_71 = arith.constant 0 : index
    %73 = vector.load %arg5[%c5_69, %c0_70, %c0_71] : memref<8x16x128xbf16, #tpu.memory_space<vmem>>, vector<1x16x128xbf16>
    %74 = vector.shape_cast %73 : vector<1x16x128xbf16> to vector<16x128xbf16>
    %cst_72 = arith.constant dense<0.000000e+00> : vector<16x128xf32>
    %75 = tpu.matmul %72, %74, %cst_72 {dimension_numbers = #tpu.dot_dimension_numbers<[1], [0], [0], [1], [0, 0, 1, 1], [], []>} : vector<16x16xbf16>, vector<16x128xbf16>, vector<16x128xf32> -> vector<16x128xf32>
    %c5_73 = arith.constant 5 : index
    %c0_74 = arith.constant 0 : index
    %c0_75 = arith.constant 0 : index
    %76 = vector.load %arg4[%c5_73, %c0_74, %c0_75] : memref<8x16x16xbf16, #tpu.memory_space<vmem>>, vector<1x16x16xbf16>
    %77 = vector.shape_cast %76 : vector<1x16x16xbf16> to vector<16x16xbf16>
    %c5_76 = arith.constant 5 : index
    %c0_77 = arith.constant 0 : index
    %c0_78 = arith.constant 0 : index
    %78 = vector.load %arg6[%c5_76, %c0_77, %c0_78] : memref<8x16x128xbf16, #tpu.memory_space<vmem>>, vector<1x16x128xbf16>
    %79 = vector.shape_cast %78 : vector<1x16x128xbf16> to vector<16x128xbf16>
    %cst_79 = arith.constant dense<0.000000e+00> : vector<16x128xf32>
    %80 = tpu.matmul %77, %79, %cst_79 {dimension_numbers = #tpu.dot_dimension_numbers<[1], [0], [0], [1], [0, 0, 1, 1], [], []>} : vector<16x16xbf16>, vector<16x128xbf16>, vector<16x128xf32> -> vector<16x128xf32>
    %81 = arith.subf %75, %80 : vector<16x128xf32>
    %82 = math.absf %81 : vector<16x128xf32>
    %83 = arith.addf %70, %82 : vector<16x128xf32>
    %c6 = arith.constant 6 : index
    %c0_80 = arith.constant 0 : index
    %c0_81 = arith.constant 0 : index
    %84 = vector.load %arg3[%c6, %c0_80, %c0_81] : memref<8x16x16xbf16, #tpu.memory_space<vmem>>, vector<1x16x16xbf16>
    %85 = vector.shape_cast %84 : vector<1x16x16xbf16> to vector<16x16xbf16>
    %c6_82 = arith.constant 6 : index
    %c0_83 = arith.constant 0 : index
    %c0_84 = arith.constant 0 : index
    %86 = vector.load %arg5[%c6_82, %c0_83, %c0_84] : memref<8x16x128xbf16, #tpu.memory_space<vmem>>, vector<1x16x128xbf16>
    %87 = vector.shape_cast %86 : vector<1x16x128xbf16> to vector<16x128xbf16>
    %cst_85 = arith.constant dense<0.000000e+00> : vector<16x128xf32>
    %88 = tpu.matmul %85, %87, %cst_85 {dimension_numbers = #tpu.dot_dimension_numbers<[1], [0], [0], [1], [0, 0, 1, 1], [], []>} : vector<16x16xbf16>, vector<16x128xbf16>, vector<16x128xf32> -> vector<16x128xf32>
    %c6_86 = arith.constant 6 : index
    %c0_87 = arith.constant 0 : index
    %c0_88 = arith.constant 0 : index
    %89 = vector.load %arg4[%c6_86, %c0_87, %c0_88] : memref<8x16x16xbf16, #tpu.memory_space<vmem>>, vector<1x16x16xbf16>
    %90 = vector.shape_cast %89 : vector<1x16x16xbf16> to vector<16x16xbf16>
    %c6_89 = arith.constant 6 : index
    %c0_90 = arith.constant 0 : index
    %c0_91 = arith.constant 0 : index
    %91 = vector.load %arg6[%c6_89, %c0_90, %c0_91] : memref<8x16x128xbf16, #tpu.memory_space<vmem>>, vector<1x16x128xbf16>
    %92 = vector.shape_cast %91 : vector<1x16x128xbf16> to vector<16x128xbf16>
    %cst_92 = arith.constant dense<0.000000e+00> : vector<16x128xf32>
    %93 = tpu.matmul %90, %92, %cst_92 {dimension_numbers = #tpu.dot_dimension_numbers<[1], [0], [0], [1], [0, 0, 1, 1], [], []>} : vector<16x16xbf16>, vector<16x128xbf16>, vector<16x128xf32> -> vector<16x128xf32>
    %94 = arith.subf %88, %93 : vector<16x128xf32>
    %95 = math.absf %94 : vector<16x128xf32>
    %96 = arith.addf %83, %95 : vector<16x128xf32>
    %c7 = arith.constant 7 : index
    %c0_93 = arith.constant 0 : index
    %c0_94 = arith.constant 0 : index
    %97 = vector.load %arg3[%c7, %c0_93, %c0_94] : memref<8x16x16xbf16, #tpu.memory_space<vmem>>, vector<1x16x16xbf16>
    %98 = vector.shape_cast %97 : vector<1x16x16xbf16> to vector<16x16xbf16>
    %c7_95 = arith.constant 7 : index
    %c0_96 = arith.constant 0 : index
    %c0_97 = arith.constant 0 : index
    %99 = vector.load %arg5[%c7_95, %c0_96, %c0_97] : memref<8x16x128xbf16, #tpu.memory_space<vmem>>, vector<1x16x128xbf16>
    %100 = vector.shape_cast %99 : vector<1x16x128xbf16> to vector<16x128xbf16>
    %cst_98 = arith.constant dense<0.000000e+00> : vector<16x128xf32>
    %101 = tpu.matmul %98, %100, %cst_98 {dimension_numbers = #tpu.dot_dimension_numbers<[1], [0], [0], [1], [0, 0, 1, 1], [], []>} : vector<16x16xbf16>, vector<16x128xbf16>, vector<16x128xf32> -> vector<16x128xf32>
    %c7_99 = arith.constant 7 : index
    %c0_100 = arith.constant 0 : index
    %c0_101 = arith.constant 0 : index
    %102 = vector.load %arg4[%c7_99, %c0_100, %c0_101] : memref<8x16x16xbf16, #tpu.memory_space<vmem>>, vector<1x16x16xbf16>
    %103 = vector.shape_cast %102 : vector<1x16x16xbf16> to vector<16x16xbf16>
    %c7_102 = arith.constant 7 : index
    %c0_103 = arith.constant 0 : index
    %c0_104 = arith.constant 0 : index
    %104 = vector.load %arg6[%c7_102, %c0_103, %c0_104] : memref<8x16x128xbf16, #tpu.memory_space<vmem>>, vector<1x16x128xbf16>
    %105 = vector.shape_cast %104 : vector<1x16x128xbf16> to vector<16x128xbf16>
    %cst_105 = arith.constant dense<0.000000e+00> : vector<16x128xf32>
    %106 = tpu.matmul %103, %105, %cst_105 {dimension_numbers = #tpu.dot_dimension_numbers<[1], [0], [0], [1], [0, 0, 1, 1], [], []>} : vector<16x16xbf16>, vector<16x128xbf16>, vector<16x128xf32> -> vector<16x128xf32>
    %107 = arith.subf %101, %106 : vector<16x128xf32>
    %108 = math.absf %107 : vector<16x128xf32>
    %109 = arith.addf %96, %108 : vector<16x128xf32>
    %c0_106 = arith.constant 0 : index
    %c0_107 = arith.constant 0 : index
    %110 = vector.load %arg8[%c0_106, %c0_107] : memref<16x128xf32, #tpu.memory_space<vmem>>, vector<16x128xf32>
    %111 = arith.addf %110, %109 : vector<16x128xf32>
    %c0_108 = arith.constant 0 : index
    %c0_109 = arith.constant 0 : index
    %112 = vector.load %arg8[%c0_108, %c0_109] : memref<16x128xf32, #tpu.memory_space<vmem>>, vector<16x128xf32>
    tpu.vector_store %arg8[%c0_108, %c0_109], %111 {strides = array<i32>} : memref<16x128xf32, #tpu.memory_space<vmem>>, vector<16x128xf32>,
    %c0_i32_110 = arith.constant 0 : i32
    %113 = arith.cmpi eq, %arg1, %c0_i32_110 : i32
    %c0_i32_111 = arith.constant 0 : i32
    %114 = arith.cmpi eq, %arg2, %c0_i32_111 : i32
    %115 = arith.andi %113, %114 : i1
    %116 = arith.extui %115 : i1 to i32
    %c0_i32_112 = arith.constant 0 : i32
    %117 = arith.cmpi ne, %116, %c0_i32_112 : i32
    scf.if %117 {
      %c0_113 = arith.constant 0 : index
      %c0_114 = arith.constant 0 : index
      %118 = vector.load %arg8[%c0_113, %c0_114] : memref<16x128xf32, #tpu.memory_space<vmem>>, vector<16x128xf32>
      %c0_115 = arith.constant 0 : index
      %c0_116 = arith.constant 0 : index
      %c0_117 = arith.constant 0 : index
      %119 = vector.load %arg7[%c0_115, %c0_116, %c0_117] : memref<1x16x128xf32, #tpu.memory_space<vmem>>, vector<1x16x128xf32>
      %120 = vector.shape_cast %119 : vector<1x16x128xf32> to vector<16x128xf32>
      %121 = vector.shape_cast %118 : vector<16x128xf32> to vector<1x16x128xf32>
      tpu.vector_store %arg7[%c0_115, %c0_116, %c0_117], %121 {strides = array<i32>} : memref<1x16x128xf32, #tpu.memory_space<vmem>>, vector<1x16x128xf32>,
    } else {
    }
    return
  }
  func.func @transform_0(%arg0: i32, %arg1: i32, %arg2: i32) -> (i32, i32, i32) {
    %c0_i32 = arith.constant 0 : i32
    %c0_i32_0 = arith.constant 0 : i32
    return %arg0, %arg2, %c0_i32 : i32, i32, i32
  }
  func.func @transform_1(%arg0: i32, %arg1: i32, %arg2: i32) -> (i32, i32, i32) {
    %c0_i32 = arith.constant 0 : i32
    %c0_i32_0 = arith.constant 0 : i32
    return %arg0, %arg2, %c0_i32 : i32, i32, i32
  }
  func.func @transform_2(%arg0: i32, %arg1: i32, %arg2: i32) -> (i32, i32, i32) {
    %c0_i32 = arith.constant 0 : i32
    %c0_i32_0 = arith.constant 0 : i32
    return %arg0, %c0_i32, %arg1 : i32, i32, i32
  }
  func.func @transform_3(%arg0: i32, %arg1: i32, %arg2: i32) -> (i32, i32, i32) {
    %c0_i32 = arith.constant 0 : i32
    %c0_i32_0 = arith.constant 0 : i32
    return %arg0, %c0_i32, %arg1 : i32, i32, i32
  }
  func.func @transform_4(%arg0: i32, %arg1: i32, %arg2: i32) -> (i32, i32, i32) {
    %c0_i32 = arith.constant 0 : i32
    %c0_i32_0 = arith.constant 0 : i32
    %c0_i32_1 = arith.constant 0 : i32
    return %arg0, %c0_i32, %c0_i32_0 : i32, i32, i32
  }
}

</mosaic_0001>

<bundles_post_ra>
// kernel: tpu_custom_call.1
= control target key start
LH: loop header
LB: loop body
LE: loop exit
PB: predicated region body
PF: predicated region fallthrough
CT: control target
= control target key end

     0   :  { %9 = vsyncpa [#allocation4], 0  ;;  %s1657_s0 = inlined_call_operand.hbm [shape: bf16[8,16,16], index: 0, kind: input, shape index: {}]   ;;  %s1658_s1 = inlined_call_operand.hbm [shape: bf16[8,16,16], index: 1, kind: input, shape index: {}]   ;;  %s1659_s2 = inlined_call_operand.hbm [shape: bf16[8,16,128], index: 2, kind: input, shape index: {}]   ;;  %s1660_s3 = inlined_call_operand.hbm [shape: bf16[8,16,128], index: 3, kind: input, shape index: {}]   ;;  %s1661_s4 = inlined_call_operand.hbm [shape: f32[1,16,128], index: 4, kind: output, shape index: {}]  }
   0x1   :  { %10 = vsyncpa [#allocation7], 0 }
   0x2   :  { %11 = vsyncpa [#allocation10], 0 }
   0x3   :  { %12 = vsyncpa [#allocation5], 0  ;;  %s1471_s15 = smov [#allocation6]   ;;  %s1472_s17 = smov [#allocation3]  }
   0x4   :  { %s30_s16 = sshll.u32 %s1471_s15, 4  ;;  %s18_s18 = sshll.u32 %s1472_s17, 4  ;;  %s31_s16 = int_to_ptr.vmem [resolvable:$true] %s30_s16  ;;  %s1507_s18 = int_to_ptr.vmem [resolvable:$true] %s18_s18 }
   0x5   :  { %s1353_s21 = scalar_lea.hbm %s1658_s1, 1024 }
   0x6   :  { %p1354_p0 = scmp.ne.s32.totalorder %s1658_s1, %s1353_s21  ;;  %p1357_p1 = scmp.lt.u32.totalorder %s1353_s21, %s1658_s1 }
   0x8   :  { %p1359_p2 = pnand %p1357_p1, %p1354_p0 }
   0xa   :  { %1362 = shalt.err (!%p1359_p2)
}
   0xb   :  { %s1363_s26 = scalar_lea.vmem %s31_s16, 1024  ;;  %p1368_p4 = scmp.lt.s32.totalorder %s31_s16, %s31_s16 }
   0xc   :  { %p1364_p3 = scmp.ne.s32.totalorder %s31_s16, %s1363_s26  ;;  %p1369_p5 = scmp.lt.s32.totalorder %s1363_s26, %s1363_s26 }
   0xe   :  { %p1370_p6 = por %p1369_p5, %p1368_p4 }
  0x10   :  { %p1371_p7 = pnand %p1370_p6, %p1364_p3 }
  0x12   :  { %1374 = shalt.err (!%p1371_p7)
}
  0x13   :  { %s1473_s27 = smov 64   ;;  %s1474_s28 = smov 4  }
  0x14   :  { %36 = dma.hbm_to_vmem [thread:$0]  %s1658_s1, 1024, %s31_s16, [#allocation7], %s1473_s27, %s1473_s27, %s1474_s28  }
  0x15   :  { %s1375_s7 = scalar_lea.hbm %s1657_s0, 1024 }
  0x16   :  { %p1376_p8 = scmp.ne.s32.totalorder %s1657_s0, %s1375_s7  ;;  %p1379_p9 = scmp.lt.u32.totalorder %s1375_s7, %s1657_s0 }
  0x18   :  { %p1381_p10 = pnand %p1379_p9, %p1376_p8 }
  0x1a   :  { %1384 = shalt.err (!%p1381_p10)
}
  0x1b   :  { %s1385_s12 = scalar_lea.vmem %s1507_s18, 1024  ;;  %p1390_p12 = scmp.lt.s32.totalorder %s1507_s18, %s1507_s18 }
  0x1c   :  { %p1386_p11 = scmp.ne.s32.totalorder %s1507_s18, %s1385_s12  ;;  %p1391_p13 = scmp.lt.s32.totalorder %s1385_s12, %s1385_s12 }
  0x1e   :  { %p1392_p0 = por %p1391_p13, %p1390_p12 }
  0x20   :  { %p1393_p1 = pnand %p1392_p0, %p1386_p11 }
  0x22   :  { %1396 = shalt.err (!%p1393_p1)
}
  0x23   :  { %24 = dma.hbm_to_vmem [thread:$0]  %s1657_s0, 1024, %s1507_s18, [#allocation4], %s1473_s27, %s1473_s27, %s1474_s28  }
  0x24   :  { %s1475_s14 = smov [#allocation8]   ;;  %s1476_s16 = smov [#allocation9]  }
  0x25   :  { %s42_s15 = sshll.u32 %s1475_s14, 4  ;;  %s54_s17 = sshll.u32 %s1476_s16, 4  ;;  %s43_s15 = int_to_ptr.vmem [resolvable:$true] %s42_s15  ;;  %s1544_s17 = int_to_ptr.vmem [resolvable:$true] %s54_s17 }
  0x26   :  { %s1397_s21 = scalar_lea.hbm %s1659_s2, 1024 }
  0x27   :  { %p1398_p2 = scmp.ne.s32.totalorder %s1659_s2, %s1397_s21  ;;  %p1401_p3 = scmp.lt.u32.totalorder %s1397_s21, %s1659_s2 }
  0x29   :  { %p1403_p4 = pnand %p1401_p3, %p1398_p2 }
  0x2b   :  { %1406 = shalt.err (!%p1403_p4)
}
  0x2c   :  { %s1407_s0 = scalar_lea.vmem %s43_s15, 1024  ;;  %p1412_p6 = scmp.lt.s32.totalorder %s43_s15, %s43_s15 }
  0x2d   :  { %p1408_p5 = scmp.ne.s32.totalorder %s43_s15, %s1407_s0  ;;  %p1413_p7 = scmp.lt.s32.totalorder %s1407_s0, %s1407_s0 }
  0x2f   :  { %p1414_p8 = por %p1413_p7, %p1412_p6 }
  0x31   :  { %p1415_p9 = pnand %p1414_p8, %p1408_p5 }
  0x33   :  { %1418 = shalt.err (!%p1415_p9)
}
  0x34   :  { %48 = dma.hbm_to_vmem [thread:$0]  %s1659_s2, 1024, %s43_s15, [#allocation7], %s1473_s27, %s1473_s27, %s1474_s28  }
  0x35   :  { %s1419_s5 = scalar_lea.hbm %s1660_s3, 1024 }
  0x36   :  { %p1420_p10 = scmp.ne.s32.totalorder %s1660_s3, %s1419_s5  ;;  %p1423_p11 = scmp.lt.u32.totalorder %s1419_s5, %s1660_s3 }
  0x38   :  { %p1425_p12 = pnand %p1423_p11, %p1420_p10 }
  0x3a   :  { %1428 = shalt.err (!%p1425_p12)
}
  0x3b   :  { %s1429_s10 = scalar_lea.vmem %s1544_s17, 1024  ;;  %p1434_p0 = scmp.lt.s32.totalorder %s1544_s17, %s1544_s17 }
  0x3c   :  { %p1430_p13 = scmp.ne.s32.totalorder %s1544_s17, %s1429_s10  ;;  %p1435_p1 = scmp.lt.s32.totalorder %s1429_s10, %s1429_s10 }
  0x3e   :  { %p1436_p2 = por %p1435_p1, %p1434_p0 }
  0x40   :  { %p1437_p3 = pnand %p1436_p2, %p1430_p13 }
  0x42   :  { %1440 = shalt.err (!%p1437_p3)
}
  0x43   :  { %60 = dma.hbm_to_vmem [thread:$0]  %s1660_s3, 1024, %s1544_s17, [#allocation10], %s1473_s27, %s1473_s27, %s1474_s28  }
  0x44   :  { %1463 = dma.done.wait [#allocation4], 1024  }
  0x45   :  { %1464 = vsyncadd [#allocation4], 4294966272 }
  0x46   :  { %1465 = dma.done.wait [#allocation7], 2048  }
  0x47   :  { %1466 = vsyncadd [#allocation7], 4294965248 }
  0x48   :  { %1467 = dma.done.wait [#allocation10], 1024  }
  0x49   :  { %1468 = vsyncadd [#allocation10], 4294966272  ;;  %v1477_v0 = vmov 0.0   ;;  %vm1478_vm0 = vmmov 0   ;;  %v1321_v1 = vld [vmem:[#allocation8] sm:$0xff]   ;;  %vm97_vm1 = vcmask 130048  }
  0x4a   :  { %1214 = vmatprep.subr.bf16.mxu0 %v1477_v0  ;;  %1220 = vmatprep.subr.bf16.mxu1 %v1477_v0  ;;  %v1322_v2 = vld [vmem:[#allocation9] sm:$0xff]   ;;  %v1325_v5 = vld [vmem:[#allocation8 + $0x8] sm:$0xff]   ;;  %v1329_v9 = vld [vmem:[#allocation8 + $0x10] sm:$0xff]   ;;  %s1479_s3 = smov [#allocation11]  }
  0x4b   :  { %1216 = vmatprep.mubr.msk.bf16.mxu0 %vm1478_vm0, %v1477_v0  ;;  %1222 = vmatprep.mubr.msk.bf16.mxu1 %vm1478_vm0, %v1477_v0  ;;  %v1323_v3 = vld [vmem:[#allocation3] sm:$0xff]   ;;  %v1326_v6 = vld [vmem:[#allocation9 + $0x8] sm:$0xff]   ;;  %v1330_v10 = vld [vmem:[#allocation9 + $0x10] sm:$0xff]   ;;  %s1120_s27 = sshll.u32 %s1479_s3, 4  ;;  %s1121_s27 = int_to_ptr.vmem [resolvable:$true] %s1120_s27 }
  0x4c   :  { %1215 = vmatpush3.bf16.msra.mxu0 %v1321_v1  ;;  %1221 = vmatpush3.bf16.msra.mxu1 %v1322_v2  ;;  %v1324_v4 = vld [vmem:[#allocation6] sm:$0xff]   ;;  %v1327_v7 = vld [vmem:[#allocation3 + $0x8] sm:$0xff]   ;;  %v1331_v11 = vld [vmem:[#allocation3 + $0x10] sm:$0xff]   ;;  %s1441_s28 = scalar_lea.vmem %s1121_s27, 256  ;;  %p1446_p5 = scmp.lt.s32.totalorder %s1121_s27, %s1121_s27 }
  0x4d   :  { %1226 = vmatprep.subr.bf16.mxu0 %v1477_v0  ;;  %1232 = vmatprep.subr.bf16.mxu1 %v1477_v0  ;;  %v1328_v8 = vld [vmem:[#allocation6 + $0x8] sm:$0xff]   ;;  %v1332_v12 = vld [vmem:[#allocation6 + $0x10] sm:$0xff]   ;;  %v1333_v13 = vld [vmem:[#allocation8 + $0x18] sm:$0xff]   ;;  %p1442_p4 = scmp.ne.s32.totalorder %s1121_s27, %s1441_s28  ;;  %p1447_p6 = scmp.lt.s32.totalorder %s1441_s28, %s1441_s28 }
  0x4e   :  { %v1334_v14 = vld [vmem:[#allocation9 + $0x18] sm:$0xff]   ;;  %v1337_v17 = vld [vmem:[#allocation8 + $0x20] sm:$0xff]   ;;  %v1341_v21 = vld [vmem:[#allocation8 + $0x28] sm:$0xff]  }
  0x4f   :  { %1217 = vmatmul.mubr.msk.bf16.vlgmr.msra.gmra.mrb[0].mxu0 %vm97_vm1, %v1323_v3  ;;  %1223 = vmatmul.mubr.msk.bf16.vlgmr.msra.gmra.mrb[0].mxu1 %vm97_vm1, %v1324_v4  ;;  %v1335_v15 = vld [vmem:[#allocation3 + $0x18] sm:$0xff]   ;;  %v1338_v18 = vld [vmem:[#allocation9 + $0x20] sm:$0xff]   ;;  %v1342_v22 = vld [vmem:[#allocation9 + $0x28] sm:$0xff]   ;;  %p1448_p7 = por %p1447_p6, %p1446_p5 }
  0x50   :  { %1227 = vmatpush3.bf16.msra.mxu0 %v1325_v5  ;;  %1233 = vmatpush3.bf16.msra.mxu1 %v1326_v6  ;;  %v1336_v16 = vld [vmem:[#allocation6 + $0x18] sm:$0xff]   ;;  %v1339_v19 = vld [vmem:[#allocation3 + $0x20] sm:$0xff]   ;;  %v1343_v23 = vld [vmem:[#allocation3 + $0x28] sm:$0xff]  }
  0x51   :  { %1228 = vmatprep.mubr.msk.bf16.mxu0 %vm1478_vm0, %v1477_v0  ;;  %1234 = vmatprep.mubr.msk.bf16.mxu1 %vm1478_vm0, %v1477_v0  ;;  %v1340_v20 = vld [vmem:[#allocation6 + $0x20] sm:$0xff]   ;;  %v1344_v24 = vld [vmem:[#allocation6 + $0x28] sm:$0xff]   ;;  %v1345_v25 = vld [vmem:[#allocation8 + $0x30] sm:$0xff]   ;;  %p1449_p8 = pnand %p1448_p7, %p1442_p4 }
  0x52   :  { %1238 = vmatprep.subr.bf16.mxu0 %v1477_v0  ;;  %1244 = vmatprep.subr.bf16.mxu1 %v1477_v0  ;;  %v1346_v26 = vld [vmem:[#allocation9 + $0x30] sm:$0xff]   ;;  %v1349_v29 = vld [vmem:[#allocation8 + $0x38] sm:$0xff]  }
  0x53   :  { %v1347_v27 = vld [vmem:[#allocation3 + $0x30] sm:$0xff]   ;;  %v1350_v30 = vld [vmem:[#allocation9 + $0x38] sm:$0xff]  }
  0x54   :  { %v1348_v28 = vld [vmem:[#allocation6 + $0x30] sm:$0xff]   ;;  %v1351_v31 = vld [vmem:[#allocation3 + $0x38] sm:$0xff]  }
  0x55   :  { %v1352_v32 = vld [vmem:[#allocation6 + $0x38] sm:$0xff]  }
  0x57   :  { %1229 = vmatmul.mubr.msk.bf16.vlgmr.msra.gmra.mrb[4].mxu0 %vm97_vm1, %v1327_v7  ;;  %1235 = vmatmul.mubr.msk.bf16.vlgmr.msra.gmra.mrb[4].mxu1 %vm97_vm1, %v1328_v8 }
  0x58   :  { %1239 = vmatpush3.bf16.msra.mxu0 %v1329_v9  ;;  %1245 = vmatpush3.bf16.msra.mxu1 %v1330_v10 }
  0x59   :  { %1240 = vmatprep.mubr.msk.bf16.mxu0 %vm1478_vm0, %v1477_v0  ;;  %1246 = vmatprep.mubr.msk.bf16.mxu1 %vm1478_vm0, %v1477_v0 }
  0x5a   :  { %1250 = vmatprep.subr.bf16.mxu0 %v1477_v0  ;;  %1256 = vmatprep.subr.bf16.mxu1 %v1477_v0 }
  0x5f   :  { %1241 = vmatmul.mubr.msk.bf16.vlgmr.msra.gmra.mrb[8].mxu0 %vm97_vm1, %v1331_v11  ;;  %1247 = vmatmul.mubr.msk.bf16.vlgmr.msra.gmra.mrb[8].mxu1 %vm97_vm1, %v1332_v12 }
  0x60   :  { %1251 = vmatpush3.bf16.msra.mxu0 %v1333_v13  ;;  %1257 = vmatpush3.bf16.msra.mxu1 %v1334_v14 }
  0x61   :  { %1252 = vmatprep.mubr.msk.bf16.mxu0 %vm1478_vm0, %v1477_v0  ;;  %1258 = vmatprep.mubr.msk.bf16.mxu1 %vm1478_vm0, %v1477_v0 }
  0x62   :  { %1262 = vmatprep.subr.bf16.mxu0 %v1477_v0  ;;  %1268 = vmatprep.subr.bf16.mxu1 %v1477_v0 }
  0x67   :  { %1253 = vmatmul.mubr.msk.bf16.vlgmr.msra.gmra.mrb[12].mxu0 %vm97_vm1, %v1335_v15  ;;  %1259 = vmatmul.mubr.msk.bf16.vlgmr.msra.gmra.mrb[12].mxu1 %vm97_vm1, %v1336_v16 }
  0x68   :  { %1263 = vmatpush3.bf16.msra.mxu0 %v1337_v17  ;;  %1269 = vmatpush3.bf16.msra.mxu1 %v1338_v18 }
  0x69   :  { %1264 = vmatprep.mubr.msk.bf16.mxu0 %vm1478_vm0, %v1477_v0  ;;  %1270 = vmatprep.mubr.msk.bf16.mxu1 %vm1478_vm0, %v1477_v0 }
  0x6a   :  { %1274 = vmatprep.subr.bf16.mxu0 %v1477_v0  ;;  %1280 = vmatprep.subr.bf16.mxu1 %v1477_v0 }
  0x6f   :  { %1265 = vmatmul.mubr.msk.bf16.vlgmr.msra.gmra.mrb[16].mxu0 %vm97_vm1, %v1339_v19  ;;  %1271 = vmatmul.mubr.msk.bf16.vlgmr.msra.gmra.mrb[16].mxu1 %vm97_vm1, %v1340_v20 }
  0x70   :  { %1275 = vmatpush3.bf16.msra.mxu0 %v1341_v21  ;;  %1281 = vmatpush3.bf16.msra.mxu1 %v1342_v22 }
  0x71   :  { %1276 = vmatprep.mubr.msk.bf16.mxu0 %vm1478_vm0, %v1477_v0  ;;  %1282 = vmatprep.mubr.msk.bf16.mxu1 %vm1478_vm0, %v1477_v0 }
  0x72   :  { %1286 = vmatprep.subr.bf16.mxu0 %v1477_v0  ;;  %1292 = vmatprep.subr.bf16.mxu1 %v1477_v0 }
  0x77   :  { %1277 = vmatmul.mubr.msk.bf16.vlgmr.msra.gmra.mrb[20].mxu0 %vm97_vm1, %v1343_v23  ;;  %1283 = vmatmul.mubr.msk.bf16.vlgmr.msra.gmra.mrb[20].mxu1 %vm97_vm1, %v1344_v24 }
  0x78   :  { %1287 = vmatpush3.bf16.msra.mxu0 %v1345_v25  ;;  %1293 = vmatpush3.bf16.msra.mxu1 %v1346_v26 }
  0x79   :  { %1288 = vmatprep.mubr.msk.bf16.mxu0 %vm1478_vm0, %v1477_v0  ;;  %1294 = vmatprep.mubr.msk.bf16.mxu1 %vm1478_vm0, %v1477_v0 }
  0x7a   :  { %1298 = vmatprep.subr.bf16.mxu0 %v1477_v0  ;;  %1304 = vmatprep.subr.bf16.mxu1 %v1477_v0 }
  0x7f   :  { %1289 = vmatmul.mubr.msk.bf16.vlgmr.msra.gmra.mrb[24].mxu0 %vm97_vm1, %v1347_v27  ;;  %1295 = vmatmul.mubr.msk.bf16.vlgmr.msra.gmra.mrb[24].mxu1 %vm97_vm1, %v1348_v28 }
  0x80   :  { %1299 = vmatpush3.bf16.msra.mxu0 %v1349_v29  ;;  %1305 = vmatpush3.bf16.msra.mxu1 %v1350_v30 }
  0x81   :  { %1300 = vmatprep.mubr.msk.bf16.mxu0 %vm1478_vm0, %v1477_v0  ;;  %1306 = vmatprep.mubr.msk.bf16.mxu1 %vm1478_vm0, %v1477_v0 }
  0x87   :  { %1301 = vmatmul.mubr.msk.bf16.vlgmr.msra.gmra.mrb[28].mxu0 %vm97_vm1, %v1351_v31  ;;  %1307 = vmatmul.mubr.msk.bf16.vlgmr.msra.gmra.mrb[28].mxu1 %vm97_vm1, %v1352_v32 }
 0x122   :  { %v135_v33 = vpop.f32.mrb[0].mxu0  ;;  %v194_v34 = vpop.f32.mrb[0].mxu1 }
 0x123   :  { %v1218_v35 = vpop.f32.mrb[1].mxu0  ;;  %v201_v36 = vsub.f32 %v135_v33, %v194_v34  ;;  %v1224_v37 = vpop.f32.mrb[1].mxu1 }
 0x124   :  { %v138_v38 = vpop.f32.mrb[2].mxu0  ;;  %v197_v39 = vpop.f32.mrb[2].mxu1 }
 0x125   :  { %v1219_v40 = vpop.f32.mrb[3].mxu0  ;;  %v202_v41 = vsub.f32 %v138_v38, %v197_v39  ;;  %v1225_v42 = vpop.f32.mrb[3].mxu1  ;;  %v203_v51 = vand.u32 2147483647, %v201_v36 }
 0x127   :  { %v204_v55 = vand.u32 2147483647, %v202_v41 }
 0x12a   :  { %v261_v43 = vpop.f32.mrb[4].mxu0  ;;  %v322_v44 = vpop.f32.mrb[4].mxu1 }
 0x12b   :  { %v1230_v45 = vpop.f32.mrb[5].mxu0  ;;  %v329_v46 = vsub.f32 %v261_v43, %v322_v44  ;;  %v1236_v47 = vpop.f32.mrb[5].mxu1 }
 0x12c   :  { %v264_v48 = vpop.f32.mrb[6].mxu0  ;;  %v325_v49 = vpop.f32.mrb[6].mxu1 }
 0x12d   :  { %v1231_v50 = vpop.f32.mrb[7].mxu0  ;;  %v331_v52 = vand.u32 2147483647, %v329_v46  ;;  %v330_v53 = vsub.f32 %v264_v48, %v325_v49  ;;  %v1237_v54 = vpop.f32.mrb[7].mxu1 }
 0x12f   :  { %v333_v56 = vadd.f32 %v331_v52, %v203_v51  ;;  %v332_v57 = vand.u32 2147483647, %v330_v53 }
 0x131   :  { %v334_v58 = vadd.f32 %v332_v57, %v204_v55 }
 0x132   :  { %v389_v59 = vpop.f32.mrb[8].mxu0  ;;  %v450_v60 = vpop.f32.mrb[8].mxu1 }
 0x133   :  { %v1242_v61 = vpop.f32.mrb[9].mxu0  ;;  %v457_v62 = vsub.f32 %v389_v59, %v450_v60  ;;  %v1248_v63 = vpop.f32.mrb[9].mxu1 }
 0x134   :  { %v392_v0 = vpop.f32.mrb[10].mxu0  ;;  %v453_v1 = vpop.f32.mrb[10].mxu1 }
 0x135   :  { %v1243_v2 = vpop.f32.mrb[11].mxu0  ;;  %v459_v3 = vand.u32 2147483647, %v457_v62  ;;  %v458_v4 = vsub.f32 %v392_v0, %v453_v1  ;;  %v1249_v5 = vpop.f32.mrb[11].mxu1 }
 0x137   :  { %v461_v6 = vadd.f32 %v459_v3, %v333_v56  ;;  %v460_v7 = vand.u32 2147483647, %v458_v4 }
 0x139   :  { %v462_v8 = vadd.f32 %v460_v7, %v334_v58 }
 0x13a   :  { %v517_v9 = vpop.f32.mrb[12].mxu0  ;;  %v578_v10 = vpop.f32.mrb[12].mxu1 }
 0x13b   :  { %v1254_v11 = vpop.f32.mrb[13].mxu0  ;;  %v585_v12 = vsub.f32 %v517_v9, %v578_v10  ;;  %v1260_v13 = vpop.f32.mrb[13].mxu1 }
 0x13c   :  { %v520_v14 = vpop.f32.mrb[14].mxu0  ;;  %v581_v15 = vpop.f32.mrb[14].mxu1 }
 0x13d   :  { %v1255_v16 = vpop.f32.mrb[15].mxu0  ;;  %v587_v17 = vand.u32 2147483647, %v585_v12  ;;  %v586_v18 = vsub.f32 %v520_v14, %v581_v15  ;;  %v1261_v19 = vpop.f32.mrb[15].mxu1 }
 0x13f   :  { %v589_v20 = vadd.f32 %v587_v17, %v461_v6  ;;  %v588_v21 = vand.u32 2147483647, %v586_v18 }
 0x141   :  { %v590_v22 = vadd.f32 %v588_v21, %v462_v8 }
 0x142   :  { %v645_v23 = vpop.f32.mrb[16].mxu0  ;;  %v706_v24 = vpop.f32.mrb[16].mxu1 }
 0x143   :  { %v1266_v25 = vpop.f32.mrb[17].mxu0  ;;  %v713_v26 = vsub.f32 %v645_v23, %v706_v24  ;;  %v1272_v27 = vpop.f32.mrb[17].mxu1 }
 0x144   :  { %v648_v28 = vpop.f32.mrb[18].mxu0  ;;  %v709_v29 = vpop.f32.mrb[18].mxu1 }
 0x145   :  { %v1267_v30 = vpop.f32.mrb[19].mxu0  ;;  %v715_v31 = vand.u32 2147483647, %v713_v26  ;;  %v714_v32 = vsub.f32 %v648_v28, %v709_v29  ;;  %v1273_v33 = vpop.f32.mrb[19].mxu1 }
 0x147   :  { %v717_v34 = vadd.f32 %v715_v31, %v589_v20  ;;  %v716_v35 = vand.u32 2147483647, %v714_v32 }
 0x149   :  { %v718_v36 = vadd.f32 %v716_v35, %v590_v22 }
 0x14a   :  { %v773_v37 = vpop.f32.mrb[20].mxu0  ;;  %v834_v38 = vpop.f32.mrb[20].mxu1 }
 0x14b   :  { %v1278_v39 = vpop.f32.mrb[21].mxu0  ;;  %v841_v40 = vsub.f32 %v773_v37, %v834_v38  ;;  %v1284_v41 = vpop.f32.mrb[21].mxu1 }
 0x14c   :  { %v776_v42 = vpop.f32.mrb[22].mxu0  ;;  %v837_v43 = vpop.f32.mrb[22].mxu1 }
 0x14d   :  { %v1279_v44 = vpop.f32.mrb[23].mxu0  ;;  %v843_v45 = vand.u32 2147483647, %v841_v40  ;;  %v842_v46 = vsub.f32 %v776_v42, %v837_v43  ;;  %v1285_v47 = vpop.f32.mrb[23].mxu1 }
 0x14f   :  { %v845_v48 = vadd.f32 %v843_v45, %v717_v34  ;;  %v844_v49 = vand.u32 2147483647, %v842_v46 }
 0x151   :  { %v846_v50 = vadd.f32 %v844_v49, %v718_v36 }
 0x152   :  { %v901_v51 = vpop.f32.mrb[24].mxu0  ;;  %v962_v52 = vpop.f32.mrb[24].mxu1 }
 0x153   :  { %v1290_v53 = vpop.f32.mrb[25].mxu0  ;;  %v969_v54 = vsub.f32 %v901_v51, %v962_v52  ;;  %v1296_v55 = vpop.f32.mrb[25].mxu1 }
 0x154   :  { %v904_v56 = vpop.f32.mrb[26].mxu0  ;;  %v965_v57 = vpop.f32.mrb[26].mxu1 }
 0x155   :  { %v1291_v58 = vpop.f32.mrb[27].mxu0  ;;  %v971_v59 = vand.u32 2147483647, %v969_v54  ;;  %v970_v60 = vsub.f32 %v904_v56, %v965_v57  ;;  %v1297_v61 = vpop.f32.mrb[27].mxu1 }
 0x157   :  { %v973_v62 = vadd.f32 %v971_v59, %v845_v48  ;;  %v972_v63 = vand.u32 2147483647, %v970_v60 }
 0x159   :  { %v974_v0 = vadd.f32 %v972_v63, %v846_v50 }
 0x15a   :  { %v1029_v1 = vpop.f32.mrb[28].mxu0  ;;  %v1090_v2 = vpop.f32.mrb[28].mxu1 }
 0x15b   :  { %v1302_v3 = vpop.f32.mrb[29].mxu0  ;;  %v1097_v4 = vsub.f32 %v1029_v1, %v1090_v2  ;;  %v1308_v5 = vpop.f32.mrb[29].mxu1 }
 0x15c   :  { %v1032_v6 = vpop.f32.mrb[30].mxu0  ;;  %v1093_v7 = vpop.f32.mrb[30].mxu1 }
 0x15d   :  { %v1303_v8 = vpop.f32.mrb[31].mxu0  ;;  %v1099_v9 = vand.u32 2147483647, %v1097_v4  ;;  %v1098_v10 = vsub.f32 %v1032_v6, %v1093_v7  ;;  %v1309_v11 = vpop.f32.mrb[31].mxu1 }
 0x15f   :  { %v1101_v12 = vadd.f32 %v1099_v9, %v973_v62  ;;  %v1100_v13 = vand.u32 2147483647, %v1098_v10 }
 0x161   :  { %1113 = vst [vmem:[#allocation11] sm:$0xff] %v1101_v12  ;;  %v1102_v14 = vadd.f32 %v1100_v13, %v974_v0 }
 0x163   :  { %1114 = vst [vmem:[#allocation11 + $0x8] sm:$0xff] %v1102_v14 }
 0x164   :  { %1452 = shalt.err (!%p1449_p8)
}
 0x165   :  { %s1453_s13 = scalar_lea.hbm %s1661_s4, 256 }
 0x166   :  { %p1454_p9 = scmp.ne.s32.totalorder %s1661_s4, %s1453_s13  ;;  %p1457_p10 = scmp.lt.u32.totalorder %s1453_s13, %s1661_s4 }
 0x168   :  { %p1459_p11 = pnand %p1457_p10, %p1454_p9 }
 0x16a   :  { %1462 = shalt.err (!%p1459_p11)
}
 0x16b   :  { %s1480_s19 = smov 128   ;;  %s1481_s20 = smov 8  }
 0x16c   :  { %1126 = dma.vmem_to_hbm [thread:$0]  %s1121_s27, 256, %s1661_s4, [#allocation5], %s1480_s19, %s1480_s19, %s1481_s20  }
 0x16d   :  { %1469 = dma.done.wait [#allocation5], 256  }
 0x16e   :  { %1470 = vsyncadd [#allocation5], 4294967040 }
 0x16f   :  { %1130 = vsyncpa [#allocation4], 1 }
 0x170   :  { %1131 = vsyncpa [#allocation7], 1 }
 0x171   :  { %1132 = vsyncpa [#allocation10], 1 }
 0x172   :  { %1133 = vsyncpa [#allocation5], 1 }

</bundles_post_ra>
